<compile_context>
chip_gen: v7x
topology: tpu7x:2x2x1
jax: 0.10.0
libtpu: 0.0.40
codegen_flags: <defaults>
</compile_context>

<pallas_src>
import functools

import jax
import jax.numpy as jnp
from jax.experimental import pallas as pl
from jax.experimental.pallas import tpu as pltpu


_HIDDEN = 64            # per-head hidden width (fixed by the PyTorch module)
_FUSED = 2 * _HIDDEN    # 128 — actor & critic fused side by side = full lane width


def _round_up(x, m):
    return (x + m - 1) // m * m


def _make_kernel(continuous: bool, s_pad: int, action_dim: int):
    H2 = _FUSED
    w1_off = 0
    w2_off = s_pad
    w3_off = s_pad + H2
    b_off = s_pad + 2 * H2

    def kernel(state_ref, slab_ref, out_ref):
        x = state_ref[...]                                   # [Bp, s_pad] f32 (zero-padded)

        # static slices into the packed parameter slab (no extra DMAs)
        w1 = slab_ref[w1_off:w1_off + s_pad, :]              # [s_pad, 128]
        w2 = slab_ref[w2_off:w2_off + H2, :]                 # [128, 128] block-diag
        w3 = slab_ref[w3_off:w3_off + H2, :]                 # [128, 128]
        bias = slab_ref[b_off:b_off + 8, :]                  # [8, 128]; rows 0..2 = b1,b2,b3
        b1 = bias[0:1, :]
        b2 = bias[1:2, :]
        b3 = bias[2:3, :]

        # fused actor|critic chain — full 128-lane width on MXU / VPU / EUP
        h = jnp.tanh(jnp.dot(x, w1, preferred_element_type=jnp.float32) + b1)
        h = jnp.tanh(jnp.dot(h, w2, preferred_element_type=jnp.float32) + b2)
        logits = jnp.dot(h, w3, preferred_element_type=jnp.float32) + b3   # [Bp, 128]

        col = jax.lax.broadcasted_iota(jnp.int32, logits.shape, 1)
        actor_lane = col < action_dim                        # cols 0:action_dim = actor
                                                             # col action_dim    = critic value
        if continuous:
            # Tanh on actor lanes, raw value on critic lane (padded lanes are zero anyway).
            out = jnp.where(actor_lane, jnp.tanh(logits), logits)
        else:
            # Softmax over actor lanes only; critic lane kept raw.
            masked = jnp.where(actor_lane, logits, jnp.float32(-1e30))
            m = jnp.max(masked, axis=-1, keepdims=True)
            e = jnp.where(actor_lane, jnp.exp(masked - m), 0.0)
            denom = jnp.sum(e, axis=-1, keepdims=True)
            probs = e * pl.reciprocal(denom, approx=True)    # EUP vrcp — free slot here
            out = jnp.where(actor_lane, probs, logits)

        out_ref[...] = out                                   # single lane-dense store

    return kernel


def _pack_params(params, state_dim, action_dim, s_pad):
    """Pack all 12 weights/biases into one [s_pad + 264, 128] f32 slab (one DMA)."""
    H, H2 = _HIDDEN, _FUSED
    f32 = jnp.float32

    w1 = jnp.zeros((s_pad, H2), f32)
    w1 = w1.at[:state_dim, :H].set(params["aw1"].astype(f32))
    w1 = w1.at[:state_dim, H:].set(params["cw1"].astype(f32))

    w2 = jnp.zeros((H2, H2), f32)
    w2 = w2.at[:H, :H].set(params["aw2"].astype(f32))
    w2 = w2.at[H:, H:].set(params["cw2"].astype(f32))

    w3 = jnp.zeros((H2, H2), f32)
    w3 = w3.at[:H, :action_dim].set(params["aw3"].astype(f32))
    w3 = w3.at[H:, action_dim:action_dim + 1].set(params["cw3"].astype(f32))

    bias = jnp.zeros((8, H2), f32)
    bias = bias.at[0, :H].set(params["ab1"].reshape(-1).astype(f32))
    bias = bias.at[0, H:].set(params["cb1"].reshape(-1).astype(f32))
    bias = bias.at[1, :H].set(params["ab2"].reshape(-1).astype(f32))
    bias = bias.at[1, H:].set(params["cb2"].reshape(-1).astype(f32))
    bias = bias.at[2, :action_dim].set(params["ab3"].reshape(-1).astype(f32))
    bias = bias.at[2, action_dim:action_dim + 1].set(params["cb3"].reshape(-1).astype(f32))

    return jnp.concatenate([w1, w2, w3, bias], axis=0)


@functools.partial(jax.jit, static_argnames=("continuous",))
def actor_critic_forward(state, params, *, continuous=True):
    """Fused actor/critic forward.

    state : [B, state_dim] float32
    params: dict with weights as [in, out] and biases as [1, out]
    returns (actor_out [B, action_dim], critic_out [B, 1])
    """
    B, state_dim = state.shape
    action_dim = params["aw3"].shape[1]
    assert params["aw2"].shape[0] == _HIDDEN
    assert action_dim + 1 <= _FUSED

    s_pad = _round_up(max(state_dim, 1), 8)
    b_pad = _round_up(max(B, 1), 8)

    slab = _pack_params(params, state_dim, action_dim, s_pad)
    x = jnp.zeros((b_pad, s_pad), jnp.float32).at[:B, :state_dim].set(
        state.astype(jnp.float32))

    flops = 2 * b_pad * (s_pad * _FUSED + _FUSED * _FUSED + _FUSED * _FUSED)
    transcendentals = 3 * b_pad * _FUSED
    bytes_accessed = 4 * (slab.size + x.size + b_pad * _FUSED)

    vmem = pl.BlockSpec(memory_space=pltpu.MemorySpace.VMEM)

    out = pl.pallas_call(
        _make_kernel(continuous, s_pad, action_dim),
        out_shape=jax.ShapeDtypeStruct((b_pad, _FUSED), jnp.float32),
        in_specs=[vmem, vmem],
        out_specs=vmem,
        cost_estimate=pl.CostEstimate(
            flops=flops,
            transcendentals=transcendentals,
            bytes_accessed=bytes_accessed),
    )(x, slab)

    actor = out[:B, :action_dim]
    critic = out[:B, action_dim:action_dim + 1]
    return actor, critic


def init_params(key, state_dim, hidden, action_dim):
    """Deterministic init mimicking PyTorch Linear default U[-1/sqrt(fan_in), 1/sqrt(fan_in)]."""
    def linear(k, fan_in, fan_out):
        kw, kb = jax.random.split(k)
        bound = 1.0 / jnp.sqrt(float(fan_in))
        w = jax.random.uniform(kw, (fan_in, fan_out), jnp.float32, -bound, bound)
        b = jax.random.uniform(kb, (1, fan_out), jnp.float32, -bound, bound)
        return w, b

    keys = jax.random.split(key, 6)
    p = {}
    p["aw1"], p["ab1"] = linear(keys[0], state_dim, hidden)
    p["aw2"], p["ab2"] = linear(keys[1], hidden, hidden)
    p["aw3"], p["ab3"] = linear(keys[2], hidden, action_dim)
    p["cw1"], p["cb1"] = linear(keys[3], state_dim, hidden)
    p["cw2"], p["cb2"] = linear(keys[4], hidden, hidden)
    p["cw3"], p["cb3"] = linear(keys[5], hidden, 1)
    return p


def reference_forward(state, params, continuous=True):
    h = jnp.tanh(state @ params["aw1"] + params["ab1"])
    h = jnp.tanh(h @ params["aw2"] + params["ab2"])
    logits = h @ params["aw3"] + params["ab3"]
    actor = jnp.tanh(logits) if continuous else jax.nn.softmax(logits, axis=-1)
    c = jnp.tanh(state @ params["cw1"] + params["cb1"])
    c = jnp.tanh(c @ params["cw2"] + params["cb2"])
    critic = c @ params["cw3"] + params["cb3"]
    return actor, critic


if __name__ == "__main__":
    key = jax.random.PRNGKey(0)
    k_state, k_params = jax.random.split(key)

    B, state_dim, hidden, action_dim = 8, 8, 64, 4

    state = jax.random.normal(k_state, (B, state_dim), jnp.float32)
    params = init_params(k_params, state_dim, hidden, action_dim)

    # ---- continuous-action branch (Tanh actor head) ----
    actor_c, critic_c = actor_critic_forward(state, params, continuous=True)
    jax.block_until_ready((actor_c, critic_c))
    ref_actor_c, ref_critic_c = reference_forward(state, params, continuous=True)
    assert actor_c.shape == (B, action_dim)
    assert critic_c.shape == (B, 1)
    assert jnp.allclose(actor_c, ref_actor_c, atol=1e-5, rtol=1e-5)
    assert jnp.allclose(critic_c, ref_critic_c, atol=1e-5, rtol=1e-5)

    # ---- discrete-action branch (Softmax actor head; approx reciprocal -> looser tol) ----
    actor_d, critic_d = actor_critic_forward(state, params, continuous=False)
    jax.block_until_ready((actor_d, critic_d))
    ref_actor_d, ref_critic_d = reference_forward(state, params, continuous=False)
    assert jnp.allclose(actor_d, ref_actor_d, atol=2e-2, rtol=2e-2)
    assert jnp.allclose(critic_d, ref_critic_d, atol=1e-5, rtol=1e-5)
    assert jnp.allclose(jnp.sum(actor_d, axis=-1), 1.0, atol=2e-2)

    # TODO(synk): MultivariateNormal/Categorical sampling, log_prob and entropy in
    # act()/evaluate() are distribution glue outside the NN hot path; leave to plain JAX.
    print("KERNEL_OK")
</pallas_src>

<mosaic_0001>
module attributes {stable_mosaic.version = 11 : i64} {
  func.func @kernel(%arg0: memref<8x8xf32, #tpu.memory_space<vmem>>, %arg1: memref<272x128xf32, #tpu.memory_space<vmem>>, %arg2: memref<8x128xf32, #tpu.memory_space<vmem>>) attributes {dimension_semantics = [], scalar_prefetch = 0 : i64, scratch_operands = 0 : i64, tpu.core_type = #tpu.core_type<tc>} {
    %c0 = arith.constant 0 : index
    %c0_0 = arith.constant 0 : index
    %0 = vector.load %arg0[%c0, %c0_0] : memref<8x8xf32, #tpu.memory_space<vmem>>, vector<8x8xf32>
    %c0_1 = arith.constant 0 : index
    %c0_2 = arith.constant 0 : index
    %1 = vector.load %arg1[%c0_1, %c0_2] : memref<272x128xf32, #tpu.memory_space<vmem>>, vector<8x128xf32>
    %c8 = arith.constant 8 : index
    %c0_3 = arith.constant 0 : index
    %2 = vector.load %arg1[%c8, %c0_3] : memref<272x128xf32, #tpu.memory_space<vmem>>, vector<128x128xf32>
    %c136 = arith.constant 136 : index
    %c0_4 = arith.constant 0 : index
    %3 = vector.load %arg1[%c136, %c0_4] : memref<272x128xf32, #tpu.memory_space<vmem>>, vector<128x128xf32>
    %c264 = arith.constant 264 : index
    %c0_5 = arith.constant 0 : index
    %4 = vector.load %arg1[%c264, %c0_5] : memref<272x128xf32, #tpu.memory_space<vmem>>, vector<8x128xf32>
    %5 = vector.extract_strided_slice %4 {offsets = [0, 0], sizes = [1, 128], strides = [1, 1]} : vector<8x128xf32> to vector<1x128xf32>
    %6 = vector.extract_strided_slice %4 {offsets = [1, 0], sizes = [1, 128], strides = [1, 1]} : vector<8x128xf32> to vector<1x128xf32>
    %7 = vector.extract_strided_slice %4 {offsets = [2, 0], sizes = [1, 128], strides = [1, 1]} : vector<8x128xf32> to vector<1x128xf32>
    %cst = arith.constant dense<0.000000e+00> : vector<8x128xf32>
    %8 = tpu.matmul %0, %1, %cst {dimension_numbers = #tpu.dot_dimension_numbers<[1], [0], [0], [1], [0, 0, 1, 1], [], []>} : vector<8x8xf32>, vector<8x128xf32>, vector<8x128xf32> -> vector<8x128xf32>
    %9 = vector.broadcast %5 : vector<1x128xf32> to vector<8x128xf32>
    %10 = arith.addf %8, %9 : vector<8x128xf32>
    %11 = math.tanh %10 : vector<8x128xf32>
    %cst_6 = arith.constant dense<0.000000e+00> : vector<8x128xf32>
    %12 = tpu.matmul %11, %2, %cst_6 {dimension_numbers = #tpu.dot_dimension_numbers<[1], [0], [0], [1], [0, 0, 1, 1], [], []>} : vector<8x128xf32>, vector<128x128xf32>, vector<8x128xf32> -> vector<8x128xf32>
    %13 = vector.broadcast %6 : vector<1x128xf32> to vector<8x128xf32>
    %14 = arith.addf %12, %13 : vector<8x128xf32>
    %15 = math.tanh %14 : vector<8x128xf32>
    %cst_7 = arith.constant dense<0.000000e+00> : vector<8x128xf32>
    %16 = tpu.matmul %15, %3, %cst_7 {dimension_numbers = #tpu.dot_dimension_numbers<[1], [0], [0], [1], [0, 0, 1, 1], [], []>} : vector<8x128xf32>, vector<128x128xf32>, vector<8x128xf32> -> vector<8x128xf32>
    %17 = vector.broadcast %7 : vector<1x128xf32> to vector<8x128xf32>
    %18 = arith.addf %16, %17 : vector<8x128xf32>
    %19 = tpu.iota {dimensions = array<i32: 1>} : vector<8x128xi32>
    %c4_i32 = arith.constant 4 : i32
    %20 = vector.broadcast %c4_i32 : i32 to vector<8x128xi32>
    %21 = arith.cmpi slt, %19, %20 : vector<8x128xi32>
    %22 = math.tanh %18 : vector<8x128xf32>
    %23 = arith.select %21, %22, %18 : vector<8x128xi1>, vector<8x128xf32>
    %c0_8 = arith.constant 0 : index
    %c0_9 = arith.constant 0 : index
    %24 = vector.load %arg2[%c0_8, %c0_9] : memref<8x128xf32, #tpu.memory_space<vmem>>, vector<8x128xf32>
    tpu.vector_store %arg2[%c0_8, %c0_9], %23 {strides = array<i32>} : memref<8x128xf32, #tpu.memory_space<vmem>>, vector<8x128xf32>,
    return
  }
}

</mosaic_0001>

<bundles_post_ra>
// kernel: actor_critic_forward.1
= control target key start
LH: loop header
LB: loop body
LE: loop exit
PB: predicated region body
PF: predicated region fallthrough
CT: control target
= control target key end

     0   :  { %vm50_vm0 = vcmask 64512   ;;  %v453_v0 = vmov 0.0   ;;  %vm454_vm1 = vmmov 0   ;;  %v455_v4 = vmov 0.0|0.0   ;;  %s595_s1 = inlined_call_operand.vmem [shape: f32[272,128], index: 1, kind: input, shape index: {}]   ;;  %s596_s0 = inlined_call_operand.vmem [shape: f32[8,8], index: 0, kind: input, shape index: {}]   ;;  %s597_s2 = inlined_call_operand.vmem [shape: f32[8,128], index: 2, kind: output, shape index: {}]  }
   0x1   :  { %321 = vmatprep.subr.mxu0 %v453_v0  ;;  %v12_v1 = vld [vmem:[%s595_s1] sm:$0xff]  ;;  %323 = vmatprep.mubr.msk.f32.mxu0 %vm454_vm1, %v453_v0  ;;  %v13_v3 = vld [vmem:[%s595_s1 + $0x8] sm:$0xff]  ;;  %v14_v5 = vld [vmem:[%s595_s1 + $0x10] sm:$0xff]  ;;  %v46_v43 = vlaneseq }
   0x2   :  { %v11_v2 = vld [vmem:[%s596_s0] sm:$0xff]  ;;  %322 = vmatpush3.msra.mxu0 %v12_v1  ;;  %396 = vmatprep.subr.bf16.mxu1 %v455_v4  ;;  %v15_v6 = vld [vmem:[%s595_s1 + $0x18] sm:$0xff]  ;;  %v397_v8 = vpack.c.bf16 %v14_v5, %v13_v3  ;;  %v17_v10 = vld [vmem:[%s595_s1 + $0x28] sm:$0xff] }
   0x3   :  { %v16_v7 = vld [vmem:[%s595_s1 + $0x20] sm:$0xff]  ;;  %324 = vmatmul.mubr.msk.f32.vlgmr.msra.gmra.mrb[0].mxu0 %vm50_vm0, %v11_v2  ;;  %358 = vmatprep.mubr.msk.f32.mxu1 %vm454_vm1, %v453_v0  ;;  %v18_v11 = vld [vmem:[%s595_s1 + $0x30] sm:$0xff]  ;;  %v19_v13 = vld [vmem:[%s595_s1 + $0x38] sm:$0xff]  ;;  %v47_v44 = vshrl.u32 %v46_v43, 7 }
   0x4   :  { %420 = vmatprep.subr.bf16.mxu0 %v455_v4  ;;  %393 = vmatprep.mubr.msk.f32.mxu0 %vm454_vm1, %v453_v0  ;;  %v400_v9 = vpack.c.bf16 %v16_v7, %v15_v6  ;;  %v403_v12 = vpack.c.bf16 %v18_v11, %v17_v10  ;;  %v20_v14 = vld [vmem:[%s595_s1 + $0x40] sm:$0xff]  ;;  %v21_v16 = vld [vmem:[%s595_s1 + $0x48] sm:$0xff]  ;;  %v22_v17 = vld [vmem:[%s595_s1 + $0x50] sm:$0xff] }
   0x5   :  { %398 = vmatpush3.bf16.msra.mxu1 %v397_v8  ;;  %v406_v15 = vpack.c.bf16 %v20_v14, %v19_v13  ;;  %v409_v18 = vpack.c.bf16 %v22_v17, %v21_v16  ;;  %v23_v19 = vld [vmem:[%s595_s1 + $0x58] sm:$0xff]  ;;  %v24_v20 = vld [vmem:[%s595_s1 + $0x60] sm:$0xff]  ;;  %v25_v22 = vld [vmem:[%s595_s1 + $0x68] sm:$0xff]  ;;  %v48_v45 = vsub.s32 0, %v47_v44  ;;  %v127_v61 = vsub.s32 1, %v47_v44 }
   0x6   :  { %399 = vmatprep.subr.bf16.mxu1 %v455_v4  ;;  %v412_v21 = vpack.c.bf16 %v24_v20, %v23_v19  ;;  %v26_v23 = vld [vmem:[%s595_s1 + $0x70] sm:$0xff]  ;;  %v27_v25 = vld [vmem:[%s595_s1 + $0x78] sm:$0xff]  ;;  %v28_v26 = vld [vmem:[%s595_s1 + $0x80] sm:$0xff]  ;;  %v202_v3 = vsub.s32 2, %v47_v44 }
   0x7   :  { %v415_v24 = vpack.c.bf16 %v26_v23, %v25_v22  ;;  %v418_v27 = vpack.c.bf16 %v28_v26, %v27_v25  ;;  %v29_v28 = vld [vmem:[%s595_s1 + $0x88] sm:$0xff]  ;;  %v30_v29 = vld [vmem:[%s595_s1 + $0x90] sm:$0xff]  ;;  %v31_v30 = vld [vmem:[%s595_s1 + $0x98] sm:$0xff] }
   0x8   :  { %v421_v31 = vpack.c.bf16 %v30_v29, %v29_v28  ;;  %v32_v32 = vld [vmem:[%s595_s1 + $0xa0] sm:$0xff]  ;;  %v33_v34 = vld [vmem:[%s595_s1 + $0xa8] sm:$0xff]  ;;  %v34_v35 = vld [vmem:[%s595_s1 + $0xb0] sm:$0xff] }
   0x9   :  { %401 = vmatpush3.bf16.msra.mxu1 %v400_v9  ;;  %v424_v33 = vpack.c.bf16 %v32_v32, %v31_v30  ;;  %v427_v36 = vpack.c.bf16 %v34_v35, %v33_v34  ;;  %v35_v37 = vld [vmem:[%s595_s1 + $0xb8] sm:$0xff]  ;;  %v36_v38 = vld [vmem:[%s595_s1 + $0xc0] sm:$0xff]  ;;  %v37_v40 = vld [vmem:[%s595_s1 + $0xc8] sm:$0xff]  ;;  %v275_v9 = vand.u32 127, %v46_v43 }
   0xa   :  { %402 = vmatprep.subr.bf16.mxu1 %v455_v4  ;;  %422 = vmatpush3.bf16.msra.mxu0 %v421_v31  ;;  %v430_v39 = vpack.c.bf16 %v36_v38, %v35_v37  ;;  %v38_v41 = vld [vmem:[%s595_s1 + $0xd0] sm:$0xff]  ;;  %v45_v46 = vld [vmem:[%s595_s1 + $0x108] sm:$0xff]  ;;  %v39_v52 = vld [vmem:[%s595_s1 + $0xd8] sm:$0xff] }
   0xb   :  { %423 = vmatprep.subr.bf16.mxu0 %v455_v4  ;;  %v433_v42 = vpack.c.bf16 %v38_v41, %v37_v40  ;;  %v49_v47 = vrot.slane %v45_v46, %v48_v45  ;;  %v40_v53 = vld [vmem:[%s595_s1 + $0xe0] sm:$0xff]  ;;  %v41_v55 = vld [vmem:[%s595_s1 + $0xe8] sm:$0xff]  ;;  %v42_v56 = vld [vmem:[%s595_s1 + $0xf0] sm:$0xff]  ;;  %v128_v62 = vrot.slane %v45_v46, %v127_v61  ;;  %v203_v5 = vrot.slane %v45_v46, %v202_v3 }
   0xc   :  { %v436_v54 = vpack.c.bf16 %v40_v53, %v39_v52  ;;  %v439_v57 = vpack.c.bf16 %v42_v56, %v41_v55  ;;  %v43_v58 = vld [vmem:[%s595_s1 + $0xf8] sm:$0xff]  ;;  %v44_v59 = vld [vmem:[%s595_s1 + $0x100] sm:$0xff]  ;;  %vm276_vm2 = vcmp.lt.s32.totalorder %v275_v9, 4 }
   0xd   :  { %404 = vmatpush3.bf16.msra.mxu1 %v403_v12  ;;  %v442_v60 = vpack.c.bf16 %v44_v59, %v43_v58 }
   0xe   :  { %405 = vmatprep.subr.bf16.mxu1 %v455_v4  ;;  %425 = vmatpush3.bf16.msra.mxu0 %v424_v33 }
   0xf   :  { %426 = vmatprep.subr.bf16.mxu0 %v455_v4 }
  0x11   :  { %407 = vmatpush3.bf16.msra.mxu1 %v406_v15 }
  0x12   :  { %408 = vmatprep.subr.bf16.mxu1 %v455_v4  ;;  %428 = vmatpush3.bf16.msra.mxu0 %v427_v36 }
  0x13   :  { %429 = vmatprep.subr.bf16.mxu0 %v455_v4 }
  0x15   :  { %410 = vmatpush3.bf16.msra.mxu1 %v409_v18 }
  0x16   :  { %411 = vmatprep.subr.bf16.mxu1 %v455_v4  ;;  %431 = vmatpush3.bf16.msra.mxu0 %v430_v39 }
  0x17   :  { %432 = vmatprep.subr.bf16.mxu0 %v455_v4 }
  0x19   :  { %413 = vmatpush3.bf16.msra.mxu1 %v412_v21 }
  0x1a   :  { %414 = vmatprep.subr.bf16.mxu1 %v455_v4  ;;  %434 = vmatpush3.bf16.msra.mxu0 %v433_v42 }
  0x1b   :  { %435 = vmatprep.subr.bf16.mxu0 %v455_v4 }
  0x1d   :  { %416 = vmatpush3.bf16.msra.mxu1 %v415_v24 }
  0x1e   :  { %417 = vmatprep.subr.bf16.mxu1 %v455_v4  ;;  %437 = vmatpush3.bf16.msra.mxu0 %v436_v54 }
  0x1f   :  { %438 = vmatprep.subr.bf16.mxu0 %v455_v4 }
  0x21   :  { %419 = vmatpush3.bf16.msra.mxu1 %v418_v27 }
  0x22   :  { %440 = vmatpush3.bf16.msra.mxu0 %v439_v57 }
  0x23   :  { %441 = vmatprep.subr.bf16.mxu0 %v455_v4 }
  0x26   :  { %443 = vmatpush3.bf16.msra.mxu0 %v442_v60 }
  0xd6   :  { %v120_v48 = vpop.f32.mrb[0].mxu0 }
  0xd7   :  { %v121_v49 = vadd.f32 %v120_v48, %v49_v47  ;;  %v325_v50 = vpop.f32.mrb[1].mxu0 }
  0xd9   :  { %447 = vtanh.f32 %v121_v49 }
  0xe3   :  { %v448_v51 = vpop.eup %447 }
  0xe4   :  { %359 = vmatmul.mubr.f32.vlgmr.msra.gmra.mrb[0].mxu1 %v448_v51 }
 0x1b7   :  { %v195_v63 = vpop.f32.mrb[0].mxu1 }
 0x1b8   :  { %v196_v0 = vadd.f32 %v195_v63, %v128_v62  ;;  %v360_v1 = vpop.f32.mrb[1].mxu1 }
 0x1ba   :  { %449 = vtanh.f32 %v196_v0 }
 0x1c4   :  { %v450_v2 = vpop.eup %449 }
 0x1c5   :  { %394 = vmatmul.mubr.f32.vlgmr.msra.gmra.mrb[2].mxu0 %v450_v2 }
 0x298   :  { %v270_v6 = vpop.f32.mrb[2].mxu0 }
 0x299   :  { %v271_v7 = vadd.f32 %v270_v6, %v203_v5  ;;  %v395_v8 = vpop.f32.mrb[3].mxu0 }
 0x29b   :  { %451 = vtanh.f32 %v271_v7 }
 0x2a5   :  { %v452_v10 = vpop.eup %451 }
 0x2a6   :  { %v278_v11 = vsel %vm276_vm2, %v452_v10, %v271_v7 }
 0x2a7   :  { %279 = vst [vmem:[%s597_s2] sm:$0xff] %v278_v11 }

</bundles_post_ra>
